<compile_context>
chip_gen: v7x
topology: tpu7x:2x2x1
jax: 0.10.0
libtpu: 0.0.40
codegen_flags: <defaults>
</compile_context>

<pallas_src>
import functools

import jax
import jax.numpy as jnp
from jax.experimental import pallas as pl
from jax.experimental.pallas import tpu as pltpu

_LANES = 128
_SUBROWS = 32      # int8 native sublane tile -> keep row blocks multiples of 32


def _round_up(x, m):
    return ((x + m - 1) // m) * m


def _cdiv(a, b):
    return -(-a // b)


# ----------------------------------------------------------------------------
# nClasses == 2: lane-dense kernel on the interleaved [a0,b0,a1,b1,...] stream
# ----------------------------------------------------------------------------
def _ce2_kernel(x_ref, y_ref, out_ref, *, block_rows, total_valid):
    # x_ref: (block_rows, 128) logits (native dtype), interleaved per sample.
    # y_ref: (block_rows, 128) int8 mapped targets (both lanes of a sample
    #        carry its target).
    # out_ref: (1, 1, 128) lane-dense per-tile partial sums.
    i = pl.program_id(0)
    nt = pl.num_programs(0)

    x = x_ref[...].astype(jnp.float32)
    y = y_ref[...].astype(jnp.int32)

    # Lane bookkeeping on a single (1, 128) row, broadcast over rows below.
    # Direction-agnostic w.r.t. the hardware rotate direction.
    lane = jax.lax.broadcasted_iota(jnp.int32, (1, _LANES), 1)
    parity = jnp.bitwise_and(lane, 1)          # 0 -> class-0 slot, 1 -> class-1 slot
    partner = lane + 1 - 2 * parity            # lane ^ 1
    src = pltpu.roll(lane, shift=1, axis=1)    # source lane of the data roll below
    pair_ok = src == partner                   # exactly one counting lane per sample

    # Bring each sample's partner logit into the same lane: one XLU pass.
    xs = pltpu.roll(x, shift=1, axis=1)

    # Binary CE in softplus form:  loss = softplus(other - picked).
    diff = x - xs
    d = jnp.where(y == parity, -diff, diff)                       # other - picked
    loss = jnp.maximum(d, 0.0) + jnp.log(1.0 + jnp.exp(-jnp.abs(d)))
    loss = jnp.where(pair_ok, loss, 0.0)

    def _store(vals):
        out_ref[0] = jnp.sum(vals, axis=0, keepdims=True)         # (1, 128) lane-dense

    @pl.when(i < nt - 1)
    def _():                                   # interior tiles: fully valid data
        _store(loss)

    @pl.when(i == nt - 1)
    def _():                                   # ragged / padded tail only
        row = jax.lax.broadcasted_iota(jnp.int32, loss.shape, 0)
        col = jax.lax.broadcasted_iota(jnp.int32, loss.shape, 1)
        flat = (i * block_rows + row) * _LANES + col
        _store(jnp.where(flat < total_valid, loss, 0.0))


def _ce_loss_2class(logits, labels, tile_rows=None):
    n, c = logits.shape
    assert c == 2
    rows = _cdiv(2 * n, _LANES)

    if tile_rows is None:
        # ~2 MiB of f32 logits / tile, but prefer >= 2 tiles when there is
        # enough work so both v7x TensorCores get a share of the grid.
        tile_rows = min(4096, max(_SUBROWS, _round_up(_cdiv(rows, 2), _SUBROWS)))
    else:
        tile_rows = max(_SUBROWS, _round_up(int(tile_rows), _SUBROWS))
    if tile_rows >= rows:
        tile_rows, num_tiles = rows, 1                 # single full-extent block
    else:
        num_tiles = _cdiv(rows, tile_rows)             # ragged last block, masked in-kernel

    # Map targets in the wrapper (no integer divide in-kernel) and ship int8:
    # 1 B per logit element instead of 4 B.
    mapped = jnp.floor_divide(labels.astype(jnp.int32) + 1, 2).astype(jnp.int8)
    y_rep = jnp.repeat(mapped, 2)

    flat = logits.reshape(-1)                          # free row-major interleave
    pad = rows * _LANES - 2 * n                        # <= 127 elements
    if pad:
        flat = jnp.pad(flat, (0, pad))
        y_rep = jnp.pad(y_rep, (0, pad))
    x2d = flat.reshape(rows, _LANES)
    y2d = y_rep.reshape(rows, _LANES)

    elems = rows * _LANES
    cost = pl.CostEstimate(
        flops=9 * elems,
        transcendentals=2 * elems,
        bytes_accessed=elems * (jnp.dtype(logits.dtype).itemsize + 1)
        + num_tiles * _LANES * 4,
    )

    kernel = functools.partial(_ce2_kernel, block_rows=tile_rows, total_valid=2 * n)
    partial_sums = pl.pallas_call(
        kernel,
        out_shape=jax.ShapeDtypeStruct((num_tiles, 1, _LANES), jnp.float32),
        grid=(num_tiles,),
        in_specs=[
            pl.BlockSpec((tile_rows, _LANES), lambda i: (i, 0)),
            pl.BlockSpec((tile_rows, _LANES), lambda i: (i, 0)),
        ],
        out_specs=pl.BlockSpec((1, 1, _LANES), lambda i: (i, 0, 0)),
        compiler_params=pltpu.CompilerParams(dimension_semantics=("parallel",)),
        cost_estimate=cost,
    )(x2d, y2d)
    return jnp.sum(partial_sums) / jnp.float32(n)


# ----------------------------------------------------------------------------
# General nClasses: batch-tiled rows, class dim on lanes
# ----------------------------------------------------------------------------
def _ce_general_kernel(x_ref, y_ref, out_ref, *, block_rows, n_true):
    i = pl.program_id(0)
    nt = pl.num_programs(0)
    x = x_ref[...].astype(jnp.float32)                 # (block_rows, C)
    y = y_ref[...]                                     # (block_rows, 1) int32, pre-mapped

    m = jnp.max(x, axis=-1, keepdims=True)
    lse = m + jnp.log(jnp.sum(jnp.exp(x - m), axis=-1, keepdims=True))
    col = jax.lax.broadcasted_iota(jnp.int32, x.shape, 1)
    picked = jnp.sum(jnp.where(col == y, x, 0.0), axis=-1, keepdims=True)
    loss = lse - picked                                # (block_rows, 1)

    @pl.when(i < nt - 1)
    def _():                                           # interior tiles: fully valid rows
        out_ref[0, 0, 0] = jnp.sum(loss)

    @pl.when(i == nt - 1)
    def _():                                           # ragged tail only
        row = jax.lax.broadcasted_iota(jnp.int32, loss.shape, 0)
        valid = (i * block_rows + row) < n_true
        out_ref[0, 0, 0] = jnp.sum(jnp.where(valid, loss, 0.0))


def _ce_loss_general(logits, labels, tile_n=None):
    n, c = logits.shape
    mapped = jnp.floor_divide(labels.astype(jnp.int32) + 1, 2).reshape(n, 1)

    if tile_n is None:
        tile_n = max(8, min(1024, (512 * 1024) // max(1, 4 * c)))   # ~512 KiB / tile
        tile_n = min(tile_n, max(8, _round_up(_cdiv(n, 2), 8)))     # >= 2 tiles if possible
    tile_n = max(8, _round_up(int(tile_n), 8))
    if tile_n >= n:
        tile_n, num_tiles = n, 1
    else:
        num_tiles = _cdiv(n, tile_n)                   # ragged last block, masked in-kernel

    cost = pl.CostEstimate(
        flops=6 * n * c,
        transcendentals=n * (c + 1),
        bytes_accessed=n * c * jnp.dtype(logits.dtype).itemsize + n * 4 + num_tiles * 4,
    )
    kernel = functools.partial(_ce_general_kernel, block_rows=tile_n, n_true=n)
    partial_sums = pl.pallas_call(
        kernel,
        out_shape=jax.ShapeDtypeStruct((num_tiles, 1, 1), jnp.float32),
        grid=(num_tiles,),
        in_specs=[
            pl.BlockSpec((tile_n, c), lambda i: (i, 0)),
            pl.BlockSpec((tile_n, 1), lambda i: (i, 0)),
        ],
        out_specs=pl.BlockSpec((1, 1, 1), lambda i: (i, 0, 0)),
        compiler_params=pltpu.CompilerParams(dimension_semantics=("parallel",)),
        cost_estimate=cost,
    )(logits, mapped)
    # TODO(synk): class-major (C, tile_n) layout for small C and a C-blocked
    # online-logsumexp inner 'arbitrary' axis for LM-vocab-sized C.
    return jnp.sum(partial_sums) / jnp.float32(n)


@functools.partial(jax.jit, static_argnames=("tile_rows", "tile_n"))
def acaris_cross_entropy_loss(logits, labels, *, tile_rows=None, tile_n=None):
    """Pallas TPU forward of ACARISCrossEntropyLoss: mean CE(logits, (labels+1)//2)."""
    n, c = logits.shape
    if c == 2:
        return _ce_loss_2class(logits, labels, tile_rows=tile_rows)
    return _ce_loss_general(logits, labels, tile_n=tile_n)


# ----------------------------------------------------------------------------
# Test
# ----------------------------------------------------------------------------
def _reference(logits, labels):
    mapped = (labels + 1) // 2
    logp = jax.nn.log_softmax(logits.astype(jnp.float32), axis=-1)
    return -jnp.mean(logp[jnp.arange(logits.shape[0]), mapped])


if __name__ == "__main__":
    key = jax.random.PRNGKey(0)
    k1, k2, k3, k4, k5, k6, k7, k8 = jax.random.split(key, 8)

    # Case 1: the real ACARIS configuration (nClasses=2), tiny batch (1 ragged tile).
    batch, n_classes = 8, 2
    logits = jax.random.normal(k1, (batch, n_classes), dtype=jnp.float32)
    labels = jax.random.bernoulli(k2, 0.5, (batch,)).astype(jnp.int32) * 2 - 1
    loss = acaris_cross_entropy_loss(logits, labels)
    jax.block_until_ready(loss)
    assert jnp.allclose(loss, _reference(logits, labels), rtol=1e-5, atol=1e-5), loss

    # Case 2: nClasses=2, bf16 logits, explicit small tile -> 2 tiles, ragged last
    # block + <=127-element lane pad, int8 label path.
    batch2 = 2500
    logits2 = jax.random.normal(k3, (batch2, 2), dtype=jnp.bfloat16)
    labels2 = jax.random.bernoulli(k4, 0.5, (batch2,)).astype(jnp.int32) * 2 - 1
    loss2 = acaris_cross_entropy_loss(logits2, labels2, tile_rows=32)
    jax.block_until_ready(loss2)
    assert jnp.allclose(loss2, _reference(logits2, labels2), rtol=1e-4, atol=1e-4), loss2

    # Case 3: general nClasses path (row-tiled, masked ragged tail), 3 tiles.
    batch3, c3 = 300, 8
    logits3 = jax.random.normal(k5, (batch3, c3), dtype=jnp.float32)
    labels3 = jax.random.bernoulli(k6, 0.5, (batch3,)).astype(jnp.int32) * 2 - 1
    loss3 = acaris_cross_entropy_loss(logits3, labels3, tile_n=128)
    jax.block_until_ready(loss3)
    assert jnp.allclose(loss3, _reference(logits3, labels3), rtol=1e-5, atol=1e-5), loss3

    # Case 4: nClasses=2, default tiling, 2N % 128 == 0 -> zero-copy (no pad),
    # 2 parallel grid tiles.
    batch4 = 8192
    logits4 = jax.random.normal(k7, (batch4, 2), dtype=jnp.float32)
    labels4 = jax.random.bernoulli(k8, 0.5, (batch4,)).astype(jnp.int32) * 2 - 1
    loss4 = acaris_cross_entropy_loss(logits4, labels4)
    jax.block_until_ready(loss4)
    assert jnp.allclose(loss4, _reference(logits4, labels4), rtol=1e-4, atol=1e-4), loss4

    print("KERNEL_OK")
</pallas_src>

<mosaic_0001>
module attributes {stable_mosaic.version = 11 : i64} {
  func.func @_ce2_kernel(%arg0: i32, %arg1: memref<1x128xf32, #tpu.memory_space<vmem>>, %arg2: memref<1x128xi8, #tpu.memory_space<vmem>>, %arg3: memref<1x1x128xf32, #tpu.memory_space<vmem>>) attributes {dimension_semantics = [#tpu.dimension_semantics<parallel>], iteration_bounds = array<i64: 1>, scalar_prefetch = 0 : i64, scratch_operands = 0 : i64, tpu.core_type = #tpu.core_type<tc>, window_params = [{transform_indices = @transform_0, window_bounds = array<i64: 1, 128>}, {transform_indices = @transform_1, window_bounds = array<i64: 1, 128>}, {transform_indices = @transform_2, window_bounds = array<i64: 1, 1, 128>}]} {
    %c0 = arith.constant 0 : index
    %c0_0 = arith.constant 0 : index
    %0 = vector.load %arg1[%c0, %c0_0] : memref<1x128xf32, #tpu.memory_space<vmem>>, vector<1x128xf32>
    %c0_1 = arith.constant 0 : index
    %c0_2 = arith.constant 0 : index
    %1 = vector.load %arg2[%c0_1, %c0_2] : memref<1x128xi8, #tpu.memory_space<vmem>>, vector<1x128xi8>
    %2 = arith.extsi %1 : vector<1x128xi8> to vector<1x128xi32>
    %3 = tpu.iota {dimensions = array<i32: 1>} : vector<1x128xi32>
    %c1_i32 = arith.constant 1 : i32
    %4 = vector.broadcast %c1_i32 : i32 to vector<1x128xi32>
    %5 = arith.andi %3, %4 : vector<1x128xi32>
    %c1_i32_3 = arith.constant 1 : i32
    %6 = vector.broadcast %c1_i32_3 : i32 to vector<1x128xi32>
    %7 = arith.addi %3, %6 : vector<1x128xi32>
    %c2_i32 = arith.constant 2 : i32
    %8 = vector.broadcast %c2_i32 : i32 to vector<1x128xi32>
    %9 = arith.muli %8, %5 : vector<1x128xi32>
    %10 = arith.subi %7, %9 : vector<1x128xi32>
    %c1_i32_4 = arith.constant 1 : i32
    %11 = tpu.dynamic_rotate %3 by %c1_i32_4 dim 1 : vector<1x128xi32>, i32 -> vector<1x128xi32>
    %12 = arith.cmpi eq, %11, %10 : vector<1x128xi32>
    %c1_i32_5 = arith.constant 1 : i32
    %13 = tpu.dynamic_rotate %0 by %c1_i32_5 dim 1 : vector<1x128xf32>, i32 -> vector<1x128xf32>
    %14 = arith.subf %0, %13 : vector<1x128xf32>
    %15 = arith.cmpi eq, %2, %5 : vector<1x128xi32>
    %cst = arith.constant 0.000000e+00 : f32
    %16 = vector.broadcast %cst : f32 to vector<1x128xf32>
    %17 = arith.subf %16, %14 : vector<1x128xf32>
    %18 = arith.select %15, %17, %14 : vector<1x128xi1>, vector<1x128xf32>
    %cst_6 = arith.constant 0.000000e+00 : f32
    %19 = vector.broadcast %cst_6 : f32 to vector<1x128xf32>
    %20 = arith.maximumf %18, %19 : vector<1x128xf32>
    %21 = math.absf %18 : vector<1x128xf32>
    %cst_7 = arith.constant 0.000000e+00 : f32
    %22 = vector.broadcast %cst_7 : f32 to vector<1x128xf32>
    %23 = arith.subf %22, %21 : vector<1x128xf32>
    %24 = math.exp %23 : vector<1x128xf32>
    %cst_8 = arith.constant 1.000000e+00 : f32
    %25 = vector.broadcast %cst_8 : f32 to vector<1x128xf32>
    %26 = arith.addf %25, %24 : vector<1x128xf32>
    %27 = math.log %26 : vector<1x128xf32>
    %28 = arith.addf %20, %27 : vector<1x128xf32>
    %cst_9 = arith.constant 0.000000e+00 : f32
    %29 = vector.broadcast %cst_9 : f32 to vector<1x128xf32>
    %30 = arith.select %12, %28, %29 : vector<1x128xi1>, vector<1x128xf32>
    %c0_i32 = arith.constant 0 : i32
    %31 = arith.cmpi slt, %arg0, %c0_i32 : i32
    %32 = arith.extui %31 : i1 to i32
    %c0_i32_10 = arith.constant 0 : i32
    %33 = arith.cmpi ne, %32, %c0_i32_10 : i32
    scf.if %33 {
      %cst_13 = arith.constant dense<0.000000e+00> : vector<128xf32>
      %37 = vector.multi_reduction <add>, %30, %cst_13 [0] : vector<1x128xf32> to vector<128xf32>
      %38 = vector.shape_cast %37 : vector<128xf32> to vector<1x128xf32>
      %c0_14 = arith.constant 0 : index
      %c0_15 = arith.constant 0 : index
      %c0_16 = arith.constant 0 : index
      %39 = vector.load %arg3[%c0_14, %c0_15, %c0_16] : memref<1x1x128xf32, #tpu.memory_space<vmem>>, vector<1x1x128xf32>
      %40 = vector.shape_cast %39 : vector<1x1x128xf32> to vector<1x128xf32>
      %41 = vector.shape_cast %38 : vector<1x128xf32> to vector<1x1x128xf32>
      tpu.vector_store %arg3[%c0_14, %c0_15, %c0_16], %41 {strides = array<i32>} : memref<1x1x128xf32, #tpu.memory_space<vmem>>, vector<1x1x128xf32>,
    } else {
    }
    %c0_i32_11 = arith.constant 0 : i32
    %34 = arith.cmpi eq, %arg0, %c0_i32_11 : i32
    %35 = arith.extui %34 : i1 to i32
    %c0_i32_12 = arith.constant 0 : i32
    %36 = arith.cmpi ne, %35, %c0_i32_12 : i32
    scf.if %36 {
      %37 = tpu.iota {dimensions = array<i32: 0>} : vector<1x128xi32>
      %38 = tpu.iota {dimensions = array<i32: 1>} : vector<1x128xi32>
      %c1_i32_13 = arith.constant 1 : i32
      %39 = arith.muli %arg0, %c1_i32_13 : i32
      %40 = vector.broadcast %39 : i32 to vector<1x128xi32>
      %41 = arith.addi %40, %37 : vector<1x128xi32>
      %c128_i32 = arith.constant 128 : i32
      %42 = vector.broadcast %c128_i32 : i32 to vector<1x128xi32>
      %43 = arith.muli %41, %42 : vector<1x128xi32>
      %44 = arith.addi %43, %38 : vector<1x128xi32>
      %c16_i32 = arith.constant 16 : i32
      %45 = vector.broadcast %c16_i32 : i32 to vector<1x128xi32>
      %46 = arith.cmpi slt, %44, %45 : vector<1x128xi32>
      %cst_14 = arith.constant 0.000000e+00 : f32
      %47 = vector.broadcast %cst_14 : f32 to vector<1x128xf32>
      %48 = arith.select %46, %30, %47 : vector<1x128xi1>, vector<1x128xf32>
      %cst_15 = arith.constant dense<0.000000e+00> : vector<128xf32>
      %49 = vector.multi_reduction <add>, %48, %cst_15 [0] : vector<1x128xf32> to vector<128xf32>
      %50 = vector.shape_cast %49 : vector<128xf32> to vector<1x128xf32>
      %c0_16 = arith.constant 0 : index
      %c0_17 = arith.constant 0 : index
      %c0_18 = arith.constant 0 : index
      %51 = vector.load %arg3[%c0_16, %c0_17, %c0_18] : memref<1x1x128xf32, #tpu.memory_space<vmem>>, vector<1x1x128xf32>
      %52 = vector.shape_cast %51 : vector<1x1x128xf32> to vector<1x128xf32>
      %53 = vector.shape_cast %50 : vector<1x128xf32> to vector<1x1x128xf32>
      tpu.vector_store %arg3[%c0_16, %c0_17, %c0_18], %53 {strides = array<i32>} : memref<1x1x128xf32, #tpu.memory_space<vmem>>, vector<1x1x128xf32>,
    } else {
    }
    return
  }
  func.func @transform_0(%arg0: i32) -> (i32, i32) {
    %c0_i32 = arith.constant 0 : i32
    %c0_i32_0 = arith.constant 0 : i32
    return %arg0, %c0_i32 : i32, i32
  }
  func.func @transform_1(%arg0: i32) -> (i32, i32) {
    %c0_i32 = arith.constant 0 : i32
    %c0_i32_0 = arith.constant 0 : i32
    return %arg0, %c0_i32 : i32, i32
  }
  func.func @transform_2(%arg0: i32) -> (i32, i32, i32) {
    %c0_i32 = arith.constant 0 : i32
    %c0_i32_0 = arith.constant 0 : i32
    %c0_i32_1 = arith.constant 0 : i32
    return %arg0, %c0_i32, %c0_i32_0 : i32, i32, i32
  }
}

</mosaic_0001>

<bundles_post_ra>
// kernel: acaris_cross_entropy_loss.1
= control target key start
LH: loop header
LB: loop body
LE: loop exit
PB: predicated region body
PF: predicated region fallthrough
CT: control target
= control target key end

     0   :  { %v14_v0 = vlaneseq  ;;  %s68_s11 = smov 1   ;;  %s93_s0 = inlined_call_operand.vmem [shape: f32[1,128], index: 0, kind: input, shape index: {}]   ;;  %s94_s1 = inlined_call_operand.vmem [shape: s8[1,128], index: 1, kind: input, shape index: {}]   ;;  %s95_s2 = inlined_call_operand.vmem [shape: f32[1,1,128], index: 2, kind: output, shape index: {}]  }
   0x1   :  { %v11_v1 = vld [vmem:[%s93_s0] sm:$0x1] }
   0x2   :  { %23 = vrot.lane.b32.xlu0 %v11_v1, %s68_s11  ;;  %v15_v2 = vand.u32 127, %v14_v0  ;;  %v50_v3 = vshrl.u32 %v14_v0, 7  ;;  %v12_v6 = vld [vmem:[%s94_s1] sm:$0x1] }
   0x3   :  { %v13_v7 = vunpack.c.0.s8 %v12_v6 }
   0x4   :  { %v53_v4 = vmul.u32 128, %v50_v3  ;;  %v16_v8 = vand.u32 1, %v15_v2  ;;  %v17_v18 = vadd.s32 1, %v15_v2 }
   0x6   :  { %20 = vrot.lane.b32.xlu0 %v15_v2, %s68_s11  ;;  %v54_v5 = vadd.s32 %v53_v4, %v15_v2  ;;  %vm26_vm0 = vcmp.eq.s32.totalorder %v13_v7, %v16_v8  ;;  %v18_v19 = vmul.u32 2, %v16_v8 }
   0x8   :  { %v19_v20 = vsub.s32 %v17_v18, %v18_v19  ;;  %vm55_vm2 = vcmp.lt.s32.totalorder %v54_v5, 16 }
  0x74   :  { %v24_v9 = vpop.permute.xlu0 %23 }
  0x75   :  { %v25_v10 = vsub.f32 %v11_v1, %v24_v9 }
  0x77   :  { %v27_v11 = vsub.f32 0.0, %v25_v10 }
  0x78   :  { %v21_v21 = vpop.permute.xlu0 %20 }
  0x79   :  { %v28_v12 = vsel %vm26_vm0, %v27_v11, %v25_v10  ;;  %vm22_vm1 = vcmp.eq.s32.totalorder %v21_v21, %v19_v20 }
  0x7a   :  { %v30_v13 = vand.u32 2147483647, %v28_v12  ;;  %v29_v23 = vmax.f32 %v28_v12, 0.0 }
  0x7c   :  { %v31_v14 = vsub.f32 0.0, %v30_v13 }
  0x7e   :  { %v32_v15 = vmul.f32 1.442695, %v31_v14 }
  0x80   :  { %64 = vpow2.f32 %v32_v15 }
  0x8a   :  { %v65_v16 = vpop.eup %64 }
  0x8b   :  { %v34_v17 = vadd.f32 1.0, %v65_v16 }
  0x8d   :  { %66 = vlog2.f32 %v34_v17 }
  0x97   :  { %v67_v22 = vpop.eup %66 }
  0x98   :  { %v36_v24 = vmul.f32 0.6931472, %v67_v22 }
  0x9a   :  { %v37_v25 = vadd.f32 %v36_v24, %v29_v23 }
  0x9c   :  { %v38_v26 = vsel %vm22_vm1, %v37_v25, 0.0 }
  0x9d   :  { %v56_v27 = vsel %vm55_vm2, %v38_v26, 0.0 }
  0x9e   :  { %58 = vst [vmem:[%s95_s2] sm:$0x1] %v56_v27 }

</bundles_post_ra>
